<compile_context>
chip_gen: v7x
topology: tpu7x:2x2x1
jax: 0.10.0
libtpu: 0.0.40
codegen_flags: <defaults>
</compile_context>

<pallas_src>
import jax
import jax.numpy as jnp
from jax.experimental import pallas as pl
from jax.experimental.pallas import tpu as pltpu

_LANE = 128
_SUBLANE = 8
_PARAM_BYTES = 4                     # params kept in f32
_TARGET_BLOCK_BYTES = 2 << 20        # ~2 MiB x/out blocks (measured sweet spot)
_VMEM_CAP_BYTES = 48 << 20           # stay under v7x's 64 MiB physical VMEM
_VMEM_FLOOR_BYTES = 16 << 20         # v5e's default scoped limit


def _round_down_at_least(v, m):
    """Round v down to a multiple of m, but never below m."""
    return max(m, (v // m) * m)


def _choose_tiles_rows_cols(rows, cols, itemsize):
    """(row_tile, col_tile) for a (rows, cols) element-wise stream.

    Targets ~_TARGET_BLOCK_BYTES per x/out block (param lane-padding included
    in the budget), keeps the lane (cols) tile a multiple of 128 (or full) and
    the sublane (rows) tile a multiple of 8 (or full).
    """
    # Lane tile: full axis when a minimal 8-row block stays under budget
    # (lane-dense stores, no interior lane masking); otherwise the largest
    # 128-multiple that fits the budget at 8 rows.
    if cols < _LANE or _SUBLANE * cols * itemsize <= _TARGET_BLOCK_BYTES:
        tt = cols
    else:
        tt = _round_down_at_least(
            _TARGET_BLOCK_BYTES // (_SUBLANE * itemsize), _LANE)
        tt = min(tt, _round_down_at_least(cols, _LANE))

    # Row tile: fill the remaining byte budget. Each row costs tt*itemsize of
    # x plus a lane-padded (2 -> 128) f32 param row in VMEM; including that
    # keeps the param buffers from blowing up when T is tiny.
    per_row_bytes = tt * itemsize + _LANE * _PARAM_BYTES
    budget_rows = _round_down_at_least(
        _TARGET_BLOCK_BYTES // max(per_row_bytes, 1), _SUBLANE)
    rt = rows if rows <= budget_rows else budget_rows

    # v7x megacore: if the grid would be a single block, split it so both
    # TensorCores get work (harmless on single-TC v5e/v6e).
    if rows <= rt and cols <= tt:
        if cols >= 2 * _LANE:
            tt = _round_down_at_least(pl.cdiv(cols, 2), _LANE)
        elif rows >= 2 * _SUBLANE:
            rt = _round_down_at_least(pl.cdiv(rows, 2), _SUBLANE)
    return rt, tt


def _choose_time_tile_nlc(batch, t, c, itemsize):
    """Sublane (T) tile for the (B, T, C) layout, ~_TARGET_BLOCK_BYTES blocks."""
    row_bytes = max(c * itemsize, 1)
    tt = _round_down_at_least(_TARGET_BLOCK_BYTES // row_bytes, _SUBLANE)
    if t <= tt:
        tt = t
    # v7x megacore: single-batch, single-block grid -> split T in two.
    if batch == 1 and t <= tt and t >= 2 * _SUBLANE:
        tt = _round_down_at_least(pl.cdiv(t, 2), _SUBLANE)
    return tt


def _vmem_limit(x_block_bytes, param_block_bytes):
    """Double-buffered x-in + out blocks, double-buffered params, headroom."""
    need = 4 * x_block_bytes + 2 * param_block_bytes + (4 << 20)
    return int(min(_VMEM_CAP_BYTES, max(_VMEM_FLOOR_BYTES, need)))


def _film_kernel_rows(p_ref, x_ref, o_ref):
    # p_ref: (Rt, 2) f32  [col 0 = 1+gamma, col 1 = beta]
    # x_ref, o_ref: (Rt, Tt)
    p = p_ref[...]
    g = p[:, 0:1]               # (Rt, 1) -> lane splat along T
    b = p[:, 1:2]
    o_ref[...] = (g * x_ref[...] + b).astype(o_ref.dtype)


def _film_kernel_nlc(p_ref, x_ref, o_ref):
    # p_ref: (1, 2, C) f32  [row 0 = 1+gamma, row 1 = beta]
    # x_ref, o_ref: (1, Tt, C)   (channels lane-dense)
    p = p_ref[...]
    g = p[:, 0:1, :]            # (1, 1, C) -> sublane splat along T
    b = p[:, 1:2, :]
    o_ref[...] = (g * x_ref[...] + b).astype(o_ref.dtype)


def film(x, s, w, b, *, permute=False):
    """FiLM forward matching the PyTorch module.

    x: (B, C, T) if permute=False, else (B, T, C)
    s: (B, dim)
    w: (dim, 2C)   (== fc.weight.T)
    b: (2C,)       (== fc.bias)
    """
    if permute:
        B, T, C = x.shape
    else:
        B, C, T = x.shape

    # ---- Hoisted affine parameters: tiny matmul runs ONCE as a plain XLA op.
    #      `1 +` folded into gamma; kept in f32 (only the output is cast). ---
    h = jnp.dot(s.astype(jnp.float32), w.astype(jnp.float32)) + b.astype(jnp.float32)
    scale = 1.0 + h[:, :C]      # (B, C) f32  == 1 + gamma
    shift = h[:, C:]            # (B, C) f32  == beta

    itemsize = jnp.dtype(x.dtype).itemsize
    cost = pl.CostEstimate(
        flops=2 * B * C * T,
        transcendentals=0,
        bytes_accessed=2 * B * C * T * itemsize + 2 * B * C * _PARAM_BYTES,
    )

    if permute:
        # (B, T, C) layout: channels already lane-dense; no transpose of x.
        params = jnp.stack([scale, shift], axis=1)              # (B, 2, C) f32
        Tt = _choose_time_tile_nlc(B, T, C, itemsize)
        grid = (B, pl.cdiv(T, Tt))
        x_block_bytes = Tt * C * itemsize
        p_block_bytes = _SUBLANE * C * _PARAM_BYTES              # (1,2,C) padded to 8 sublanes
        compiler_params = pltpu.CompilerParams(
            dimension_semantics=("parallel", "parallel"),
            vmem_limit_bytes=_vmem_limit(x_block_bytes, p_block_bytes),
        )
        return pl.pallas_call(
            _film_kernel_nlc,
            out_shape=jax.ShapeDtypeStruct((B, T, C), x.dtype),
            grid=grid,
            in_specs=[
                pl.BlockSpec((1, 2, C), lambda bi, ti: (bi, 0, 0)),
                pl.BlockSpec((1, Tt, C), lambda bi, ti: (bi, ti, 0)),
            ],
            out_specs=pl.BlockSpec((1, Tt, C), lambda bi, ti: (bi, ti, 0)),
            compiler_params=compiler_params,
            cost_estimate=cost,
        )(params, x)

    # permute=False (B, C, T): flatten batch*channels into one row axis so the
    # blocks are big, sublane-dense and independent of C (no (1,C,Tt) padding
    # waste for small C). The reshapes are no-copy collapses of contiguous dims.
    rows = B * C
    x2 = x.reshape(rows, T)
    params = jnp.stack([scale.reshape(rows), shift.reshape(rows)], axis=1)  # (rows, 2) f32

    Rt, Tt = _choose_tiles_rows_cols(rows, T, itemsize)
    grid = (pl.cdiv(rows, Rt), pl.cdiv(T, Tt))                  # T-tiles innermost
    x_block_bytes = Rt * Tt * itemsize
    p_block_bytes = Rt * _LANE * _PARAM_BYTES                   # (Rt,2) lane-padded to 128
    compiler_params = pltpu.CompilerParams(
        dimension_semantics=("parallel", "parallel"),
        vmem_limit_bytes=_vmem_limit(x_block_bytes, p_block_bytes),
    )
    # TODO(synk): if T < 128 the output stores are sub-lane-width (masked vst);
    # prefer the permute=True (B, T, C) layout upstream in that regime rather
    # than adding a transpose fallback (3x HBM traffic on a mem-bound op).
    out2 = pl.pallas_call(
        _film_kernel_rows,
        out_shape=jax.ShapeDtypeStruct((rows, T), x.dtype),
        grid=grid,
        in_specs=[
            pl.BlockSpec((Rt, 2), lambda ri, ti: (ri, 0)),       # params: fetched once per row tile
            pl.BlockSpec((Rt, Tt), lambda ri, ti: (ri, ti)),
        ],
        out_specs=pl.BlockSpec((Rt, Tt), lambda ri, ti: (ri, ti)),
        compiler_params=compiler_params,
        cost_estimate=cost,
    )(params, x2)
    return out2.reshape(B, C, T)


if __name__ == "__main__":
    key = jax.random.PRNGKey(0)
    B, C, T, dim = 2, 4, 16, 32  # num_features=C, time length T, style dim
    k1, k2, k3, k4, k5 = jax.random.split(key, 5)

    x = jax.random.normal(k1, (B, C, T), dtype=jnp.float32)       # permute=False input
    x_nlc = jax.random.normal(k5, (B, T, C), dtype=jnp.float32)   # permute=True input
    s = jax.random.normal(k2, (B, dim), dtype=jnp.float32)

    # Deterministic nn.Linear(dim, 2C)-style init (uniform in +-1/sqrt(dim)).
    bound = 1.0 / float(dim) ** 0.5
    w_torch = jax.random.uniform(k3, (2 * C, dim), minval=-bound, maxval=bound,
                                 dtype=jnp.float32)   # fc.weight (2C, dim)
    bias = jax.random.uniform(k4, (2 * C,), minval=-bound, maxval=bound,
                              dtype=jnp.float32)      # fc.bias   (2C,)
    w = w_torch.T  # (dim, 2C)

    out = jax.block_until_ready(film(x, s, w, bias, permute=False))
    out_p = jax.block_until_ready(film(x_nlc, s, w, bias, permute=True))

    # Pure-JAX reference (mirrors the PyTorch forward exactly).
    h = s @ w + bias
    gamma, beta = h[:, :C], h[:, C:]
    ref = (1.0 + gamma)[:, :, None] * x + beta[:, :, None]
    ref_p = (1.0 + gamma)[:, None, :] * x_nlc + beta[:, None, :]

    assert jnp.allclose(out, ref, atol=1e-5, rtol=1e-5), "FiLM (NCL) mismatch"
    assert jnp.allclose(out_p, ref_p, atol=1e-5, rtol=1e-5), "FiLM (NLC) mismatch"

    # Second, slightly larger case: exercises multi-block grids, edge-tile
    # masking on both paths, and the B=1 megacore T-split (still small).
    B2, C2, T2, dim2 = 2, 12, 300, 32
    j1, j2, j3, j4, j5 = jax.random.split(jax.random.PRNGKey(1), 5)
    x2 = jax.random.normal(j1, (B2, C2, T2), dtype=jnp.float32)
    x2_nlc = jax.random.normal(j5, (1, 40, C2), dtype=jnp.float32)
    s2 = jax.random.normal(j2, (B2, dim2), dtype=jnp.float32)
    s2_nlc = s2[:1]
    w2 = jax.random.uniform(j3, (dim2, 2 * C2), minval=-bound, maxval=bound,
                            dtype=jnp.float32)
    b2 = jax.random.uniform(j4, (2 * C2,), minval=-bound, maxval=bound,
                            dtype=jnp.float32)

    out2 = jax.block_until_ready(film(x2, s2, w2, b2, permute=False))
    out2_p = jax.block_until_ready(film(x2_nlc, s2_nlc, w2, b2, permute=True))
    h2 = s2 @ w2 + b2
    ref2 = (1.0 + h2[:, :C2])[:, :, None] * x2 + h2[:, C2:][:, :, None]
    h2p = s2_nlc @ w2 + b2
    ref2_p = (1.0 + h2p[:, :C2])[:, None, :] * x2_nlc + h2p[:, C2:][:, None, :]
    assert jnp.allclose(out2, ref2, atol=1e-5, rtol=1e-5), "FiLM (NCL, tiled) mismatch"
    assert jnp.allclose(out2_p, ref2_p, atol=1e-5, rtol=1e-5), "FiLM (NLC, B=1) mismatch"

    print("KERNEL_OK")
</pallas_src>

<mosaic_0001>
module attributes {stable_mosaic.version = 11 : i64} {
  func.func @_film_kernel_rows(%arg0: i32, %arg1: i32, %arg2: memref<8x2xf32, #tpu.memory_space<vmem>>, %arg3: memref<8x16xf32, #tpu.memory_space<vmem>>, %arg4: memref<8x16xf32, #tpu.memory_space<vmem>>) attributes {dimension_semantics = [#tpu.dimension_semantics<parallel>, #tpu.dimension_semantics<parallel>], iteration_bounds = array<i64: 1, 1>, scalar_prefetch = 0 : i64, scratch_operands = 0 : i64, tpu.core_type = #tpu.core_type<tc>, window_params = [{transform_indices = @transform_0, window_bounds = array<i64: 8, 2>}, {transform_indices = @transform_1, window_bounds = array<i64: 8, 16>}, {transform_indices = @transform_2, window_bounds = array<i64: 8, 16>}]} {
    %c0 = arith.constant 0 : index
    %c0_0 = arith.constant 0 : index
    %0 = vector.load %arg2[%c0, %c0_0] : memref<8x2xf32, #tpu.memory_space<vmem>>, vector<8x2xf32>
    %1 = vector.extract_strided_slice %0 {offsets = [0, 0], sizes = [8, 1], strides = [1, 1]} : vector<8x2xf32> to vector<8x1xf32>
    %2 = vector.extract_strided_slice %0 {offsets = [0, 1], sizes = [8, 1], strides = [1, 1]} : vector<8x2xf32> to vector<8x1xf32>
    %c0_1 = arith.constant 0 : index
    %c0_2 = arith.constant 0 : index
    %3 = vector.load %arg3[%c0_1, %c0_2] : memref<8x16xf32, #tpu.memory_space<vmem>>, vector<8x16xf32>
    %4 = vector.broadcast %1 : vector<8x1xf32> to vector<8x16xf32>
    %5 = arith.mulf %4, %3 : vector<8x16xf32>
    %6 = vector.broadcast %2 : vector<8x1xf32> to vector<8x16xf32>
    %7 = arith.addf %5, %6 : vector<8x16xf32>
    %c0_3 = arith.constant 0 : index
    %c0_4 = arith.constant 0 : index
    %8 = vector.load %arg4[%c0_3, %c0_4] : memref<8x16xf32, #tpu.memory_space<vmem>>, vector<8x16xf32>
    tpu.vector_store %arg4[%c0_3, %c0_4], %7 {strides = array<i32>} : memref<8x16xf32, #tpu.memory_space<vmem>>, vector<8x16xf32>,
    return
  }
  func.func @transform_0(%arg0: i32, %arg1: i32) -> (i32, i32) {
    %c0_i32 = arith.constant 0 : i32
    %c0_i32_0 = arith.constant 0 : i32
    return %arg0, %c0_i32 : i32, i32
  }
  func.func @transform_1(%arg0: i32, %arg1: i32) -> (i32, i32) {
    %c0_i32 = arith.constant 0 : i32
    return %arg0, %arg1 : i32, i32
  }
  func.func @transform_2(%arg0: i32, %arg1: i32) -> (i32, i32) {
    %c0_i32 = arith.constant 0 : i32
    return %arg0, %arg1 : i32, i32
  }
}

</mosaic_0001>

<bundles_post_ra>
// kernel: tpu_custom_call.1
= control target key start
LH: loop header
LB: loop body
LE: loop exit
PB: predicated region body
PF: predicated region fallthrough
CT: control target
= control target key end

     0   :  { %s106_s0 = inlined_call_operand.vmem [shape: f32[8,2], index: 0, kind: input, shape index: {}]   ;;  %s107_s1 = inlined_call_operand.vmem [shape: f32[8,16], index: 1, kind: input, shape index: {}]   ;;  %s108_s2 = inlined_call_operand.hbm [shape: f32[8,16], index: 2, kind: output, shape index: {}]  }
   0x1   :  { %v12_v0 = vld [vmem:[%s106_s0] sm:$0xff] }
   0x2   :  { %7 = vsyncpa [#allocation3], 0  ;;  %v70_v1 = vmov 0   ;;  %v71_v2 = vmov 1   ;;  %v13_v4 = vld [vmem:[%s107_s1] sm:$0xff]  ;;  %s72_s13 = smov [#allocation2]  }
   0x3   :  { %44 = vset.pattern.permute.xlu0 %v70_v1  ;;  %s33_s14 = sshll.u32 %s72_s13, 4  ;;  %vm25_vm0 = vcmask 130048   ;;  %s34_s14 = int_to_ptr.vmem [resolvable:$true] %s33_s14 }
   0x4   :  { %16 = vperm.xlu0 %44, %v12_v0   ;;  %s46_s0 = scalar_lea.vmem %s34_s14, 128  ;;  %p51_p1 = scmp.lt.s32.totalorder %s34_s14, %s34_s14 }
   0x5   :  { %p47_p0 = scmp.ne.s32.totalorder %s34_s14, %s46_s0  ;;  %p52_p2 = scmp.lt.s32.totalorder %s46_s0, %s46_s0 }
   0x7   :  { %p53_p3 = por %p52_p2, %p51_p1 }
   0x8   :  { %45 = vset.pattern.permute.xlu0 %v71_v2 }
   0x9   :  { %21 = vperm.xlu0 %45, %v12_v0   ;;  %p54_p4 = pnand %p53_p3, %p47_p0 }
  0x83   :  { %v17_v3 = vpop.permute.xlu0 %16 }
  0x84   :  { %v19_v5 = vmul.f32 %v17_v3, %v13_v4 }
  0x88   :  { %v22_v6 = vpop.permute.xlu0 %21 }
  0x89   :  { %v24_v7 = vadd.f32 %v22_v6, %v19_v5 }
  0x8b   :  { %26 = vst.msk [vmem:[#allocation2] sm:$0xff] %vm25_vm0, %v24_v7 }
  0x8c   :  { %57 = shalt.err (!%p54_p4)
}
  0x8d   :  { %s58_s17 = scalar_lea.hbm %s108_s2, 128 }
  0x8e   :  { %p59_p5 = scmp.ne.s32.totalorder %s108_s2, %s58_s17  ;;  %p62_p6 = scmp.lt.u32.totalorder %s58_s17, %s108_s2 }
  0x90   :  { %p64_p7 = pnand %p62_p6, %p59_p5 }
  0x92   :  { %67 = shalt.err (!%p64_p7)
}
  0x93   :  { %36 = dma.vmem_to_hbm [thread:$0]  %s34_s14, 128, %s108_s2, [#allocation3]  }
  0x94   :  { %68 = dma.done.wait [#allocation3], 128  }
  0x95   :  { %69 = vsyncadd [#allocation3], 4294967168 }
  0x96   :  { %40 = vsyncpa [#allocation3], 1 }

</bundles_post_ra>
